<compile_context>
chip_gen: v7x
topology: tpu7x:2x2x1
jax: 0.10.0
libtpu: 0.0.40
codegen_flags: <defaults>
</compile_context>

<pallas_src>
import jax
import jax.numpy as jnp
from jax.experimental import pallas as pl
from jax.experimental.pallas import tpu as pltpu


_LANE = 128
_SUBLANE = 8
_TS_CANDIDATES = (2048, 1024, 512, 256, 128, 64, 32, 16, 8)


def _round_up(x, m):
    return ((x + m - 1) // m) * m


def _mean_pool_kernel(h_ref, m_ref, inv_ref, o_ref, acc_ref):
    # h_ref   : (TB, TS, TH) hidden-state tile, native dtype (f32 / bf16 / ...)
    # m_ref   : (TB, TS, 1)  mask tile (0/1), same dtype as h (or f32)
    # inv_ref : (TB, 1)      f32 precomputed 1 / clamp(sum(mask), 1e-9)
    # o_ref   : (TB, TH)     f32 output tile (block index constant over S axis)
    # acc_ref : (TB, TH)     f32 VMEM accumulator for sum(h * mask) over S
    s = pl.program_id(2)

    @pl.when(s == 0)
    def _init():
        acc_ref[...] = jnp.zeros_like(acc_ref)

    # Trailing size-1 lane broadcast; multiply in native dtype, accumulate f32.
    acc_ref[...] += jnp.sum(h_ref[...] * m_ref[...], axis=1, dtype=jnp.float32)

    @pl.when(s == pl.num_programs(2) - 1)
    def _finalize():
        o_ref[...] = (acc_ref[...] * inv_ref[...]).astype(o_ref.dtype)


def _select_tiles(B, S, H, itemsize, max_block_bytes):
    # --- batch tile -------------------------------------------------------
    if B <= _SUBLANE:
        TB, Bp = B, B                      # full-dim block, no padding
    else:
        TB = _SUBLANE
        Bp = _round_up(B, TB)

    # --- hidden tile: prefer full H (contiguous DMA rows, mask fetched once);
    # split only so >=2 parallel grid tiles exist for v7x's two TensorCores.
    TH = H
    if H % _LANE == 0 and (Bp // TB) == 1 and H >= 2 * _LANE:
        best = None
        t = _LANE
        while t <= H // 2:
            if H % t == 0:
                best = t                    # largest 128-multiple divisor <= H/2
            t += _LANE
        if best is not None:
            TH = best

    # --- sequence tile: largest candidate whose hidden block fits the
    # per-buffer VMEM budget; pad S with zero-mask rows when needed. ---------
    row_bytes = TB * TH * itemsize
    ts_fit = [t for t in _TS_CANDIDATES if t * row_bytes <= max_block_bytes]
    if not ts_fit:
        ts_fit = [_SUBLANE]
    if S <= ts_fit[0]:
        TS, Sp = S, S                       # whole sequence in one block
    else:
        TS = ts_fit[0]
        for t in ts_fit:                    # prefer a >=256 exact divisor (no padding)
            if t >= 256 and S % t == 0:
                TS = t
                break
        Sp = _round_up(S, TS)
    return TB, TS, TH, Bp, Sp


def mean_pooling(last_hidden_state, attention_mask, *,
                 max_block_bytes=6 * 1024 * 1024):
    """Masked mean over the sequence axis.

    last_hidden_state: (B, S, H) float (f32 / bf16 / ...)
    attention_mask   : (B, S)    int / bool / float 0-1 mask
    Returns          : (B, H)    float32 (matches torch's `.float()` promotion)
    """
    B, S, H = last_hidden_state.shape
    h_dtype = last_hidden_state.dtype
    itemsize = jnp.dtype(h_dtype).itemsize

    TB, TS, TH, Bp, Sp = _select_tiles(B, S, H, itemsize, max_block_bytes)

    # Denominator: exact f32 (torch `.float()` semantics), computed once in
    # the wrapper so the kernel has no per-step cross-lane reductions.
    mask_f32 = attention_mask.astype(jnp.float32)
    inv_denom = 1.0 / jnp.clip(jnp.sum(mask_f32, axis=1, keepdims=True),
                               1e-9, None)                          # (B, 1) f32

    # Kernel-side mask: 0/1 integer/bool masks are exact in the hidden dtype
    # (halves VPU width for bf16); fractional float masks stay f32 to keep
    # torch promotion semantics.
    if jnp.issubdtype(attention_mask.dtype, jnp.floating):
        mask_k = mask_f32
    else:
        mask_k = attention_mask.astype(h_dtype)
    mask_k = mask_k[:, :, None]                                     # (B, S, 1)

    # Pad batch / sequence so every block is full. Padded rows carry mask = 0,
    # which is mathematically exact for the masked mean.
    h = last_hidden_state
    if Sp != S or Bp != B:
        h = jnp.pad(h, ((0, Bp - B), (0, Sp - S), (0, 0)))
        mask_k = jnp.pad(mask_k, ((0, Bp - B), (0, Sp - S), (0, 0)))
    if Bp != B:
        inv_denom = jnp.pad(inv_denom, ((0, Bp - B), (0, 0)), constant_values=1.0)

    grid = (Bp // TB, H // TH, Sp // TS)

    out = pl.pallas_call(
        _mean_pool_kernel,
        out_shape=jax.ShapeDtypeStruct((Bp, H), jnp.float32),
        grid_spec=pltpu.PrefetchScalarGridSpec(
            num_scalar_prefetch=0,
            grid=grid,
            in_specs=[
                pl.BlockSpec((TB, TS, TH), lambda b, hh, s: (b, s, hh)),
                pl.BlockSpec((TB, TS, 1), lambda b, hh, s: (b, s, 0)),
                pl.BlockSpec((TB, 1), lambda b, hh, s: (b, 0)),
            ],
            out_specs=pl.BlockSpec((TB, TH), lambda b, hh, s: (b, hh)),
            scratch_shapes=[pltpu.VMEM((TB, TH), jnp.float32)],
        ),
        compiler_params=pltpu.CompilerParams(
            dimension_semantics=("parallel", "parallel", "arbitrary"),
            vmem_limit_bytes=32 * 1024 * 1024),
    )(h, mask_k, inv_denom)

    return out[:B] if Bp != B else out


def _reference(last_hidden_state, attention_mask):
    mask_f = attention_mask.astype(jnp.float32)[..., None]
    hf = last_hidden_state.astype(jnp.float32)
    sum_emb = jnp.sum(hf * mask_f, axis=1)
    sum_mask = jnp.clip(jnp.sum(mask_f, axis=1), 1e-9, None)
    return sum_emb / sum_mask


if __name__ == "__main__":
    key = jax.random.PRNGKey(0)
    k1, k2, k3, k4, k5, k6 = jax.random.split(key, 6)

    # 1) Small f32 case matching the module's forward signature.
    B, S, H = 2, 8, 32
    h1 = jax.random.normal(k1, (B, S, H), dtype=jnp.float32)
    m1 = (jax.random.uniform(k2, (B, S)) > 0.3).astype(jnp.int32)
    out1 = jax.block_until_ready(mean_pooling(h1, m1))
    ref1 = _reference(h1, m1)
    assert out1.shape == (B, H)
    assert jnp.allclose(out1, ref1, atol=1e-5, rtol=1e-5), "mismatch (f32)"

    # 2) bf16, 128-multiple H: exercises the H split (>=2 parallel tiles for
    #    v7x's two TensorCores) and native-dtype streaming.
    B2, S2, H2 = 8, 512, 384
    h2 = jax.random.normal(k3, (B2, S2, H2), dtype=jnp.bfloat16)
    m2 = (jax.random.uniform(k4, (B2, S2)) > 0.3).astype(jnp.int32)
    out2 = jax.block_until_ready(mean_pooling(h2, m2))
    ref2 = _reference(h2, m2)
    assert out2.shape == (B2, H2)
    assert jnp.allclose(out2, ref2, atol=1e-3, rtol=1e-3), "mismatch (bf16)"

    # 3) Non-divisible B and S with a tiny VMEM budget to force the S-tiling /
    #    zero-mask padding / multi-step accumulator path at small shapes.
    B3, S3, H3 = 10, 37, 96
    h3 = jax.random.normal(k5, (B3, S3, H3), dtype=jnp.float32)
    m3 = (jax.random.uniform(k6, (B3, S3)) > 0.3).astype(jnp.int32)
    out3 = jax.block_until_ready(mean_pooling(h3, m3, max_block_bytes=32 * 1024))
    ref3 = _reference(h3, m3)
    assert out3.shape == (B3, H3)
    assert jnp.allclose(out3, ref3, atol=1e-5, rtol=1e-5), "mismatch (padded)"

    print("KERNEL_OK")
</pallas_src>

<mosaic_0001>
module attributes {stable_mosaic.version = 11 : i64} {
  func.func @_mean_pool_kernel(%arg0: i32, %arg1: i32, %arg2: i32, %arg3: memref<2x8x32xf32, #tpu.memory_space<vmem>>, %arg4: memref<2x8x1xf32, #tpu.memory_space<vmem>>, %arg5: memref<2x1xf32, #tpu.memory_space<vmem>>, %arg6: memref<2x32xf32, #tpu.memory_space<vmem>>, %arg7: memref<2x32xf32, #tpu.memory_space<vmem>>) attributes {dimension_semantics = [#tpu.dimension_semantics<parallel>, #tpu.dimension_semantics<parallel>, #tpu.dimension_semantics<arbitrary>], iteration_bounds = array<i64: 1, 1, 1>, scalar_prefetch = 0 : i64, scratch_operands = 1 : i64, tpu.core_type = #tpu.core_type<tc>, window_params = [{transform_indices = @transform_0, window_bounds = array<i64: 2, 8, 32>}, {transform_indices = @transform_1, window_bounds = array<i64: 2, 8, 1>}, {transform_indices = @transform_2, window_bounds = array<i64: 2, 1>}, {transform_indices = @transform_3, window_bounds = array<i64: 2, 32>}]} {
    %c0_i32 = arith.constant 0 : i32
    %0 = arith.cmpi eq, %arg2, %c0_i32 : i32
    %1 = arith.extui %0 : i1 to i32
    %c0_i32_0 = arith.constant 0 : i32
    %2 = arith.cmpi ne, %1, %c0_i32_0 : i32
    scf.if %2 {
      %cst_12 = arith.constant 0.000000e+00 : f32
      %14 = vector.broadcast %cst_12 : f32 to vector<2x32xf32>
      %c0_13 = arith.constant 0 : index
      %c0_14 = arith.constant 0 : index
      %15 = vector.load %arg7[%c0_13, %c0_14] : memref<2x32xf32, #tpu.memory_space<vmem>>, vector<2x32xf32>
      tpu.vector_store %arg7[%c0_13, %c0_14], %14 {strides = array<i32>} : memref<2x32xf32, #tpu.memory_space<vmem>>, vector<2x32xf32>,
    } else {
    }
    %c0 = arith.constant 0 : index
    %c0_1 = arith.constant 0 : index
    %3 = vector.load %arg7[%c0, %c0_1] : memref<2x32xf32, #tpu.memory_space<vmem>>, vector<2x32xf32>
    %c0_2 = arith.constant 0 : index
    %c0_3 = arith.constant 0 : index
    %c0_4 = arith.constant 0 : index
    %4 = vector.load %arg3[%c0_2, %c0_3, %c0_4] : memref<2x8x32xf32, #tpu.memory_space<vmem>>, vector<2x8x32xf32>
    %c0_5 = arith.constant 0 : index
    %c0_6 = arith.constant 0 : index
    %c0_7 = arith.constant 0 : index
    %5 = vector.load %arg4[%c0_5, %c0_6, %c0_7] : memref<2x8x1xf32, #tpu.memory_space<vmem>>, vector<2x8x1xf32>
    %6 = vector.broadcast %5 : vector<2x8x1xf32> to vector<2x8x32xf32>
    %7 = arith.mulf %4, %6 : vector<2x8x32xf32>
    %cst = arith.constant dense<0.000000e+00> : vector<2x32xf32>
    %8 = vector.multi_reduction <add>, %7, %cst [1] : vector<2x8x32xf32> to vector<2x32xf32>
    %9 = arith.addf %3, %8 : vector<2x32xf32>
    %c0_8 = arith.constant 0 : index
    %c0_9 = arith.constant 0 : index
    %10 = vector.load %arg7[%c0_8, %c0_9] : memref<2x32xf32, #tpu.memory_space<vmem>>, vector<2x32xf32>
    tpu.vector_store %arg7[%c0_8, %c0_9], %9 {strides = array<i32>} : memref<2x32xf32, #tpu.memory_space<vmem>>, vector<2x32xf32>,
    %c0_i32_10 = arith.constant 0 : i32
    %11 = arith.cmpi eq, %arg2, %c0_i32_10 : i32
    %12 = arith.extui %11 : i1 to i32
    %c0_i32_11 = arith.constant 0 : i32
    %13 = arith.cmpi ne, %12, %c0_i32_11 : i32
    scf.if %13 {
      %c0_12 = arith.constant 0 : index
      %c0_13 = arith.constant 0 : index
      %14 = vector.load %arg7[%c0_12, %c0_13] : memref<2x32xf32, #tpu.memory_space<vmem>>, vector<2x32xf32>
      %c0_14 = arith.constant 0 : index
      %c0_15 = arith.constant 0 : index
      %15 = vector.load %arg5[%c0_14, %c0_15] : memref<2x1xf32, #tpu.memory_space<vmem>>, vector<2x1xf32>
      %16 = vector.broadcast %15 : vector<2x1xf32> to vector<2x32xf32>
      %17 = arith.mulf %14, %16 : vector<2x32xf32>
      %c0_16 = arith.constant 0 : index
      %c0_17 = arith.constant 0 : index
      %18 = vector.load %arg6[%c0_16, %c0_17] : memref<2x32xf32, #tpu.memory_space<vmem>>, vector<2x32xf32>
      tpu.vector_store %arg6[%c0_16, %c0_17], %17 {strides = array<i32>} : memref<2x32xf32, #tpu.memory_space<vmem>>, vector<2x32xf32>,
    } else {
    }
    return
  }
  func.func @transform_0(%arg0: i32, %arg1: i32, %arg2: i32) -> (i32, i32, i32) {
    %c0_i32 = arith.constant 0 : i32
    return %arg0, %arg2, %arg1 : i32, i32, i32
  }
  func.func @transform_1(%arg0: i32, %arg1: i32, %arg2: i32) -> (i32, i32, i32) {
    %c0_i32 = arith.constant 0 : i32
    %c0_i32_0 = arith.constant 0 : i32
    return %arg0, %arg2, %c0_i32 : i32, i32, i32
  }
  func.func @transform_2(%arg0: i32, %arg1: i32, %arg2: i32) -> (i32, i32) {
    %c0_i32 = arith.constant 0 : i32
    %c0_i32_0 = arith.constant 0 : i32
    return %arg0, %c0_i32 : i32, i32
  }
  func.func @transform_3(%arg0: i32, %arg1: i32, %arg2: i32) -> (i32, i32) {
    %c0_i32 = arith.constant 0 : i32
    return %arg0, %arg1 : i32, i32
  }
}

</mosaic_0001>

<bundles_post_ra>
// kernel: tpu_custom_call.1
= control target key start
LH: loop header
LB: loop body
LE: loop exit
PB: predicated region body
PF: predicated region fallthrough
CT: control target
= control target key end

     0   :  { %v116_v2 = vmov 0   ;;  %s169_s0 = inlined_call_operand.vmem [shape: f32[2,8,32], index: 0, kind: input, shape index: {}]   ;;  %s170_s1 = inlined_call_operand.vmem [shape: f32[2,8,1], index: 1, kind: input, shape index: {}]   ;;  %s171_s2 = inlined_call_operand.vmem [shape: f32[2,1], index: 2, kind: input, shape index: {}]   ;;  %s172_s3 = inlined_call_operand.hbm [shape: f32[2,32], index: 3, kind: output, shape index: {}]  }
   0x1   :  { %v24_v0 = vld [vmem:[%s170_s1] sm:$0xff]  ;;  %90 = vset.pattern.permute.xlu0 %v116_v2  ;;  %91 = vset.pattern.permute.xlu1 %v116_v2 }
   0x2   :  { %v65_v1 = vld [vmem:[%s171_s2] sm:$0x3] }
   0x3   :  { %8 = vsyncpa [#allocation4], 0  ;;  %28 = vperm.xlu0 %90, %v24_v0   ;;  %68 = vperm.xlu1 %91, %v65_v1   ;;  %v25_v3 = vld [vmem:[%s170_s1 + $0x8] sm:$0xff]  ;;  %vm19_vm0 = vcmask 254976   ;;  %v117_v4 = vmov 0.0   ;;  %v22_v5 = vld [vmem:[%s169_s0] sm:$0xff] }
   0x4   :  { %20 = vst.msk [vmem:[#allocation2] sm:$0x3] %vm19_vm0, %v117_v4  ;;  %vm38_vm1 = vcmask 261120   ;;  %v23_v8 = vld [vmem:[%s169_s0 + $0x8] sm:$0xff]  ;;  %vm55_vm2 = vcmask 1041409   ;;  %s118_s0 = smov [#allocation3]  }
   0x5   :  { %s79_s1 = sshll.u32 %s118_s0, 4  ;;  %s80_s1 = int_to_ptr.vmem [resolvable:$true] %s79_s1 }
   0x6   :  { %s92_s21 = scalar_lea.vmem %s80_s1, 32  ;;  %p97_p1 = scmp.lt.s32.totalorder %s80_s1, %s80_s1 }
   0x7   :  { %33 = vperm.xlu0 %90, %v25_v3   ;;  %p93_p0 = scmp.ne.s32.totalorder %s80_s1, %s92_s21  ;;  %p98_p2 = scmp.lt.s32.totalorder %s92_s21, %s92_s21 }
   0x9   :  { %p99_p3 = por %p98_p2, %p97_p1 }
   0xb   :  { %v21_v25 = vld [vmem:[#allocation2] sm:$0x3]  ;;  %p100_p4 = pnand %p99_p3, %p93_p0 }
  0x82   :  { %v29_v6 = vpop.permute.xlu0 %28  ;;  %v69_v28 = vpop.permute.xlu1 %68 }
  0x83   :  { %v36_v7 = vmul.f32 %v29_v6, %v22_v5 }
  0x85   :  { %v39_v9 = vsel %vm38_vm1, %v36_v7, 0.0 }
  0x86   :  { %v40_v10 = vrot.slane %v39_v9, 4  ;;  %v34_v11 = vpop.permute.xlu0 %33 }
  0x87   :  { %v37_v12 = vmul.f32 %v34_v11, %v23_v8 }
  0x88   :  { %v41_v13 = vadd.f32 %v40_v10, %v39_v9 }
  0x89   :  { %v46_v14 = vsel %vm38_vm1, %v37_v12, 0.0 }
  0x8a   :  { %v42_v15 = vrot.slane %v41_v13, 2  ;;  %v47_v16 = vrot.slane %v46_v14, 4 }
  0x8c   :  { %v43_v17 = vadd.f32 %v42_v15, %v41_v13  ;;  %v48_v18 = vadd.f32 %v47_v16, %v46_v14 }
  0x8e   :  { %v49_v19 = vrot.slane %v48_v18, 2  ;;  %v44_v20 = vrot.slane %v43_v17, 1 }
  0x90   :  { %v50_v21 = vadd.f32 %v49_v19, %v48_v18  ;;  %v45_v23 = vadd.f32 %v44_v20, %v43_v17 }
  0x92   :  { %v51_v22 = vrot.slane %v50_v21, 1 }
  0x94   :  { %v52_v24 = vadd.f32 %v51_v22, %v50_v21 }
  0x96   :  { %v56_v26 = vsel %vm55_vm2, %v52_v24, %v45_v23 }
  0x97   :  { %v58_v27 = vadd.f32 %v56_v26, %v21_v25 }
  0x99   :  { %60 = vst.msk [vmem:[#allocation2] sm:$0x3] %vm19_vm0, %v58_v27 }
  0xa0   :  { %v64_v29 = vld [vmem:[#allocation2] sm:$0x3] }
  0xa1   :  { %v71_v30 = vmul.f32 %v69_v28, %v64_v29 }
  0xa3   :  { %72 = vst.msk [vmem:[#allocation3] sm:$0x3] %vm19_vm0, %v71_v30 }
  0xa4   :  { %103 = shalt.err (!%p100_p4)
}
  0xa5   :  { %s104_s24 = scalar_lea.hbm %s172_s3, 32 }
  0xa6   :  { %p105_p5 = scmp.ne.s32.totalorder %s172_s3, %s104_s24  ;;  %p108_p6 = scmp.lt.u32.totalorder %s104_s24, %s172_s3 }
  0xa8   :  { %p110_p7 = pnand %p108_p6, %p105_p5 }
  0xaa   :  { %113 = shalt.err (!%p110_p7)
}
  0xab   :  { %82 = dma.vmem_to_hbm [thread:$0]  %s80_s1, 32, %s172_s3, [#allocation4]  }
  0xac   :  { %114 = dma.done.wait [#allocation4], 32  }
  0xad   :  { %115 = vsyncadd [#allocation4], 4294967264 }
  0xae   :  { %86 = vsyncpa [#allocation4], 1 }

</bundles_post_ra>
